<compile_context>
chip_gen: v5e
topology: v5e:2x2
jax: 0.10.0
libtpu: 0.0.40
codegen_flags: <defaults>
</compile_context>

<pallas_src>
import functools

import jax
import jax.numpy as jnp
from jax.experimental import pallas as pl
from jax.experimental.pallas import tpu as pltpu


# --------------------------------------------------------------------------
# Packed path: whole spatial extent (and several images) per block.
# --------------------------------------------------------------------------
def _packed_kernel(x_ref, w1t_ref, w2t_ref, out_ref, *, hw):
    """x_ref: (Nb, C, HW); w1t: (C, hid); w2t: (hid, C); out_ref: (1, Nb, C)."""
    x = x_ref[...].astype(jnp.float32)                     # (Nb, C, HW)
    avg = jnp.sum(x, axis=-1) * jnp.float32(1.0 / hw)      # (Nb, C)
    mx = jnp.max(x, axis=-1)                               # (Nb, C)

    w1t = w1t_ref[...]
    w2t = w2t_ref[...]

    def mlp(v):                                            # (Nb, C) -> (Nb, C)
        h = jnp.maximum(
            jnp.dot(v, w1t, preferred_element_type=jnp.float32), 0.0)
        return jnp.dot(h, w2t, preferred_element_type=jnp.float32)

    att = jax.nn.sigmoid(mlp(avg) + mlp(mx))               # (Nb, C)
    out_ref[0] = att.astype(out_ref.dtype)


# --------------------------------------------------------------------------
# Streaming path: (N, K) grid with lane-wide VPU accumulators.
# --------------------------------------------------------------------------
def _fold_tile(x_ref, s_acc, m_acc, *, k, tile, width, hw):
    """Element-wise (VPU-only) fold of the current (1, C, tile) tile into
    lane-wide (C, width) running sum / max partials.  hw=None => no mask."""
    for j in range(tile // width):                         # static, small
        off = j * width
        chunk = x_ref[0, :, pl.ds(off, width)].astype(jnp.float32)  # (C, width)
        if hw is not None:
            pos = (k * tile + off
                   + jax.lax.broadcasted_iota(jnp.int32, chunk.shape, 1))
            valid = pos < hw
            s_c = jnp.where(valid, chunk, 0.0)
            m_c = jnp.where(valid, chunk, -jnp.inf)
        else:
            s_c = chunk
            m_c = chunk
        s_acc = s_acc + s_c
        m_acc = jnp.maximum(m_acc, m_c)
    return s_acc, m_acc


def _stream_kernel(x_ref, w1t_ref, w2t_ref, out_ref, sum_ref, max_ref,
                   *, hw, tile, width):
    """x_ref: (1, C, tile); out_ref: (1, 1, C); sum/max_ref: (C, width) f32."""
    k = pl.program_id(1)
    nk = pl.num_programs(1)
    is_last = k == nk - 1
    ragged = (hw % tile) != 0

    @pl.when(k == 0)
    def _init():
        sum_ref[...] = jnp.zeros_like(sum_ref)
        max_ref[...] = jnp.full_like(max_ref, -jnp.inf)

    def _accumulate(masked):
        s, m = _fold_tile(x_ref, sum_ref[...], max_ref[...],
                          k=k, tile=tile, width=width,
                          hw=hw if masked else None)
        sum_ref[...] = s
        max_ref[...] = m

    if ragged:
        # Steady-state tiles are fully in-bounds: no mask work on them.
        @pl.when(k < nk - 1)
        def _steady():
            _accumulate(masked=False)

        @pl.when(is_last)
        def _tail():
            _accumulate(masked=True)
    else:
        _accumulate(masked=False)

    @pl.when(is_last)
    def _finalize():
        inv_hw = jnp.float32(1.0 / hw)                     # static, no divide
        avg_col = jnp.sum(sum_ref[...], axis=-1, keepdims=True) * inv_hw  # (C,1)
        max_col = jnp.max(max_ref[...], axis=-1, keepdims=True)           # (C,1)
        pooled = jnp.concatenate([avg_col, max_col], axis=1)              # (C,2)
        h = jax.lax.dot_general(
            pooled, w1t_ref[...],
            dimension_numbers=(((0,), (0,)), ((), ())),
            preferred_element_type=jnp.float32)                           # (2,hid)
        h = jnp.maximum(h, 0.0)
        o = jnp.dot(h, w2t_ref[...], preferred_element_type=jnp.float32)  # (2,C)
        att = jax.nn.sigmoid(o[0:1] + o[1:2])                             # (1,C)
        out_ref[0] = att.astype(out_ref.dtype)


# --------------------------------------------------------------------------
# Wrapper
# --------------------------------------------------------------------------
def _vmem_capacity_bytes():
    try:
        return int(pltpu.get_tpu_info().vmem_capacity_bytes)
    except Exception:
        return 64 * 1024 * 1024            # conservative (v7x-sized) fallback


def channel_attention(x_nchw, w1, w2, *, block_budget_bytes=None):
    """x_nchw: (N, C, H, W); w1: (C//r, C); w2: (C, C//r). Returns (N, C, 1, 1)."""
    N, C, H, W = x_nchw.shape
    HW = H * W
    hidden = w1.shape[0]

    if not jnp.issubdtype(x_nchw.dtype, jnp.floating):
        x_nchw = x_nchw.astype(jnp.float32)   # -inf masking needs a float dtype

    x_flat = x_nchw.reshape(N, C, HW)                      # native dtype
    w1t = jnp.transpose(w1).astype(jnp.float32)            # (C, hidden)
    w2t = jnp.transpose(w2).astype(jnp.float32)            # (hidden, C)
    out_dtype = x_flat.dtype
    itemsize = x_flat.dtype.itemsize

    vmem_cap = _vmem_capacity_bytes()
    if block_budget_bytes is None:
        # ~16 MiB x-blocks on 128 MiB VMEM parts (v5e/v6e), ~8 MiB on v7x.
        block_budget = max(1 << 20, min(16 << 20, vmem_cap // 8))
    else:
        block_budget = int(block_budget_bytes)

    per_image = C * HW * itemsize
    weight_bytes = 2 * 2 * C * hidden * 4

    cost = pl.CostEstimate(
        flops=3 * N * C * HW + 16 * N * C * hidden,
        transcendentals=2 * N * C,
        bytes_accessed=(x_flat.size * itemsize
                        + (w1.size + w2.size) * 4
                        + N * C * itemsize),
    )

    if per_image <= min(block_budget, 2 << 20):
        # ---------------- packed path ----------------
        nb = max(1, min(N, min(block_budget, 2 << 20) // per_image))
        if N > 1:
            nb = min(nb, -(-N // 2))       # >=2 blocks so v7x megacore has work
        G = pl.cdiv(N, nb)
        x_block_bytes = nb * per_image

        kernel = functools.partial(_packed_kernel, hw=HW)
        grid_spec = pltpu.PrefetchScalarGridSpec(
            num_scalar_prefetch=0,
            grid=(G,),
            in_specs=[
                pl.BlockSpec((nb, C, HW), lambda g: (g, 0, 0)),
                pl.BlockSpec((C, hidden), lambda g: (0, 0)),
                pl.BlockSpec((hidden, C), lambda g: (0, 0)),
            ],
            out_specs=pl.BlockSpec((1, nb, C), lambda g: (g, 0, 0)),
        )
        vmem_limit = 4 * x_block_bytes + weight_bytes + (4 << 20)
        vmem_limit = min(max(vmem_limit, 16 << 20),
                         max(32 << 20, vmem_cap - (16 << 20)))

        out = pl.pallas_call(
            kernel,
            out_shape=jax.ShapeDtypeStruct((G, nb, C), out_dtype),
            grid_spec=grid_spec,
            compiler_params=pltpu.CompilerParams(
                dimension_semantics=("parallel",),
                vmem_limit_bytes=int(vmem_limit)),
            cost_estimate=cost,
        )(x_flat, w1t, w2t)
        att_nc = out.reshape(G * nb, C)[:N]
    else:
        # ---------------- streaming path ----------------
        lanes = 128
        hw_padded = pl.cdiv(HW, lanes) * lanes
        acc_budget = min(2 << 20, max(block_budget // 4, C * lanes * 4))
        width = max(lanes, (acc_budget // (C * 4)) // lanes * lanes)
        width = min(width, hw_padded)
        nchunk = max(1, min(8,
                            block_budget // (C * itemsize * width),
                            pl.cdiv(hw_padded, width)))
        tile = width * nchunk
        K = pl.cdiv(HW, tile)
        x_block_bytes = C * tile * itemsize

        kernel = functools.partial(_stream_kernel, hw=HW, tile=tile, width=width)
        grid_spec = pltpu.PrefetchScalarGridSpec(
            num_scalar_prefetch=0,
            grid=(N, K),                                   # reduction axis last
            in_specs=[
                pl.BlockSpec((1, C, tile), lambda n, k: (n, 0, k)),
                pl.BlockSpec((C, hidden), lambda n, k: (0, 0)),
                pl.BlockSpec((hidden, C), lambda n, k: (0, 0)),
            ],
            out_specs=pl.BlockSpec((1, 1, C), lambda n, k: (n, 0, 0)),
            scratch_shapes=[
                pltpu.VMEM((C, width), jnp.float32),       # running sum partials
                pltpu.VMEM((C, width), jnp.float32),       # running max partials
            ],
        )
        scratch_bytes = 2 * C * width * 4
        vmem_limit = (2 * x_block_bytes + 2 * scratch_bytes
                      + weight_bytes + (2 << 20))
        vmem_limit = min(max(vmem_limit, 16 << 20),
                         max(32 << 20, vmem_cap - (16 << 20)))

        # TODO(synk): when N < number of TensorCores (v7x, N==1), also split
        # the HW reduction into a leading parallel axis with per-core partials.
        out = pl.pallas_call(
            kernel,
            out_shape=jax.ShapeDtypeStruct((N, 1, C), out_dtype),
            grid_spec=grid_spec,
            compiler_params=pltpu.CompilerParams(
                dimension_semantics=("parallel", "arbitrary"),
                vmem_limit_bytes=int(vmem_limit)),
            cost_estimate=cost,
        )(x_flat, w1t, w2t)
        att_nc = out.reshape(N, C)

    return att_nc.reshape(N, C, 1, 1)


# --------------------------------------------------------------------------
# Reference and self-test
# --------------------------------------------------------------------------
def _reference(x_nchw, w1, w2):
    xf = x_nchw.astype(jnp.float32)
    avg = jnp.mean(xf, axis=(2, 3))                        # (N, C)
    mx = jnp.max(xf, axis=(2, 3))                          # (N, C)

    def mlp(v):
        return jnp.maximum(v @ w1.T, 0.0) @ w2.T

    out = jax.nn.sigmoid(mlp(avg) + mlp(mx))
    return out.reshape(*avg.shape, 1, 1).astype(x_nchw.dtype)


if __name__ == "__main__":
    key = jax.random.PRNGKey(0)
    kx1, kx2, kx3, kx4, k1, k2 = jax.random.split(key, 6)

    N, C, ratio = 2, 64, 16
    hidden = C // ratio                                    # 4

    # Conv2d(channel, channel//ratio, 1, bias=False) weight -> (hidden, C)
    w1 = 0.1 * jax.random.normal(k1, (hidden, C), dtype=jnp.float32)
    # Conv2d(channel//ratio, channel, 1, bias=False) weight -> (C, hidden)
    w2 = 0.1 * jax.random.normal(k2, (C, hidden), dtype=jnp.float32)

    def check(x, out, name):
        ref = _reference(x, w1, w2)
        assert out.shape == ref.shape, f"shape mismatch: {name}"
        assert jnp.allclose(out, ref, atol=1e-5, rtol=1e-4), f"mismatch: {name}"

    # 1) packed path, HW = 256.
    x1 = jax.random.normal(kx1, (N, C, 16, 16), dtype=jnp.float32)
    o1 = channel_attention(x1, w1, w2)
    jax.block_until_ready(o1)
    check(x1, o1, "packed 16x16")

    # 2) packed path, odd HW = 225 (lane-underfilled full-dim block).
    x2 = jax.random.normal(kx2, (N, C, 15, 15), dtype=jnp.float32)
    o2 = channel_attention(x2, w1, w2)
    jax.block_until_ready(o2)
    check(x2, o2, "packed 15x15")

    # 3) streaming path forced via tiny block budget: T=128, K=4, ragged tail.
    x3 = jax.random.normal(kx3, (N, C, 20, 20), dtype=jnp.float32)
    o3 = channel_attention(x3, w1, w2, block_budget_bytes=C * 128 * 4)
    jax.block_until_ready(o3)
    check(x3, o3, "stream T=128 K=4")

    # 3b) streaming path: 2 chunks per tile, K=2, ragged masked tail.
    o3b = channel_attention(x3, w1, w2, block_budget_bytes=C * 256 * 4)
    jax.block_until_ready(o3b)
    check(x3, o3b, "stream T=256 K=2")

    # 4) streaming path with wide (1024-lane) accumulators, single masked tile.
    x4 = jax.random.normal(kx4, (N, C, 40, 40), dtype=jnp.float32)
    o4 = channel_attention(x4, w1, w2, block_budget_bytes=1 << 20)
    jax.block_until_ready(o4)
    check(x4, o4, "stream wide-acc")

    print("KERNEL_OK")
</pallas_src>

<mosaic_0001>
module attributes {stable_mosaic.version = 11 : i64} {
  func.func @_packed_kernel(%arg0: i32, %arg1: memref<1x64x256xf32, #tpu.memory_space<vmem>>, %arg2: memref<64x4xf32, #tpu.memory_space<vmem>>, %arg3: memref<4x64xf32, #tpu.memory_space<vmem>>, %arg4: memref<1x1x64xf32, #tpu.memory_space<vmem>>) attributes {dimension_semantics = [#tpu.dimension_semantics<parallel>], iteration_bounds = array<i64: 2>, scalar_prefetch = 0 : i64, scratch_operands = 0 : i64, tpu.core_type = #tpu.core_type<tc>, window_params = [{transform_indices = @transform_0, window_bounds = array<i64: 1, 64, 256>}, {pipeline_mode = #tpu.pipeline_mode<synchronous>, transform_indices = @transform_1, window_bounds = array<i64: 64, 4>}, {pipeline_mode = #tpu.pipeline_mode<synchronous>, transform_indices = @transform_2, window_bounds = array<i64: 4, 64>}, {transform_indices = @transform_3, window_bounds = array<i64: 1, 1, 64>}]} {
    %c0 = arith.constant 0 : index
    %c0_0 = arith.constant 0 : index
    %c0_1 = arith.constant 0 : index
    %0 = vector.load %arg1[%c0, %c0_0, %c0_1] : memref<1x64x256xf32, #tpu.memory_space<vmem>>, vector<1x64x256xf32>
    %cst = arith.constant dense<0.000000e+00> : vector<1x64xf32>
    %1 = vector.multi_reduction <add>, %0, %cst [2] : vector<1x64x256xf32> to vector<1x64xf32>
    %cst_2 = arith.constant 3.906250e-03 : f32
    %2 = vector.broadcast %cst_2 : f32 to vector<1x64xf32>
    %3 = arith.mulf %1, %2 : vector<1x64xf32>
    %cst_3 = arith.constant dense<0xFF800000> : vector<1x64xf32>
    %4 = vector.multi_reduction <maximumf>, %0, %cst_3 [2] : vector<1x64x256xf32> to vector<1x64xf32>
    %c0_4 = arith.constant 0 : index
    %c0_5 = arith.constant 0 : index
    %5 = vector.load %arg2[%c0_4, %c0_5] : memref<64x4xf32, #tpu.memory_space<vmem>>, vector<64x4xf32>
    %c0_6 = arith.constant 0 : index
    %c0_7 = arith.constant 0 : index
    %6 = vector.load %arg3[%c0_6, %c0_7] : memref<4x64xf32, #tpu.memory_space<vmem>>, vector<4x64xf32>
    %cst_8 = arith.constant dense<0.000000e+00> : vector<1x4xf32>
    %7 = tpu.matmul %3, %5, %cst_8 {dimension_numbers = #tpu.dot_dimension_numbers<[1], [0], [0], [1], [0, 0, 1, 1], [], []>} : vector<1x64xf32>, vector<64x4xf32>, vector<1x4xf32> -> vector<1x4xf32>
    %cst_9 = arith.constant 0.000000e+00 : f32
    %8 = vector.broadcast %cst_9 : f32 to vector<1x4xf32>
    %9 = arith.maximumf %7, %8 : vector<1x4xf32>
    %cst_10 = arith.constant dense<0.000000e+00> : vector<1x64xf32>
    %10 = tpu.matmul %9, %6, %cst_10 {dimension_numbers = #tpu.dot_dimension_numbers<[1], [0], [0], [1], [0, 0, 1, 1], [], []>} : vector<1x4xf32>, vector<4x64xf32>, vector<1x64xf32> -> vector<1x64xf32>
    %cst_11 = arith.constant dense<0.000000e+00> : vector<1x4xf32>
    %11 = tpu.matmul %4, %5, %cst_11 {dimension_numbers = #tpu.dot_dimension_numbers<[1], [0], [0], [1], [0, 0, 1, 1], [], []>} : vector<1x64xf32>, vector<64x4xf32>, vector<1x4xf32> -> vector<1x4xf32>
    %cst_12 = arith.constant 0.000000e+00 : f32
    %12 = vector.broadcast %cst_12 : f32 to vector<1x4xf32>
    %13 = arith.maximumf %11, %12 : vector<1x4xf32>
    %cst_13 = arith.constant dense<0.000000e+00> : vector<1x64xf32>
    %14 = tpu.matmul %13, %6, %cst_13 {dimension_numbers = #tpu.dot_dimension_numbers<[1], [0], [0], [1], [0, 0, 1, 1], [], []>} : vector<1x4xf32>, vector<4x64xf32>, vector<1x64xf32> -> vector<1x64xf32>
    %15 = arith.addf %10, %14 : vector<1x64xf32>
    %16 = arith.negf %15 : vector<1x64xf32>
    %17 = math.exp %16 : vector<1x64xf32>
    %cst_14 = arith.constant 1.000000e+00 : f32
    %18 = vector.broadcast %cst_14 : f32 to vector<1x64xf32>
    %19 = arith.addf %18, %17 : vector<1x64xf32>
    %20 = arith.divf %18, %19 : vector<1x64xf32>
    %c0_15 = arith.constant 0 : index
    %c0_16 = arith.constant 0 : index
    %c0_17 = arith.constant 0 : index
    %21 = vector.load %arg4[%c0_15, %c0_16, %c0_17] : memref<1x1x64xf32, #tpu.memory_space<vmem>>, vector<1x1x64xf32>
    %22 = vector.shape_cast %21 : vector<1x1x64xf32> to vector<1x64xf32>
    %23 = vector.shape_cast %20 : vector<1x64xf32> to vector<1x1x64xf32>
    tpu.vector_store %arg4[%c0_15, %c0_16, %c0_17], %23 {strides = array<i32>} : memref<1x1x64xf32, #tpu.memory_space<vmem>>, vector<1x1x64xf32>,
    return
  }
  func.func @transform_0(%arg0: i32) -> (i32, i32, i32) {
    %c0_i32 = arith.constant 0 : i32
    %c0_i32_0 = arith.constant 0 : i32
    %c0_i32_1 = arith.constant 0 : i32
    return %arg0, %c0_i32, %c0_i32_0 : i32, i32, i32
  }
  func.func @transform_1(%arg0: i32) -> (i32, i32) {
    %c0_i32 = arith.constant 0 : i32
    %c0_i32_0 = arith.constant 0 : i32
    %c0_i32_1 = arith.constant 0 : i32
    return %c0_i32, %c0_i32_0 : i32, i32
  }
  func.func @transform_2(%arg0: i32) -> (i32, i32) {
    %c0_i32 = arith.constant 0 : i32
    %c0_i32_0 = arith.constant 0 : i32
    %c0_i32_1 = arith.constant 0 : i32
    return %c0_i32, %c0_i32_0 : i32, i32
  }
  func.func @transform_3(%arg0: i32) -> (i32, i32, i32) {
    %c0_i32 = arith.constant 0 : i32
    %c0_i32_0 = arith.constant 0 : i32
    %c0_i32_1 = arith.constant 0 : i32
    return %arg0, %c0_i32, %c0_i32_0 : i32, i32, i32
  }
}

</mosaic_0001>

<bundles_post_ra>
// kernel: tpu_custom_call.1
= control target key start
LH: loop header
LB: loop body
LE: loop exit
PB: predicated region body
PF: predicated region fallthrough
CT: control target
= control target key end

     0   :  { %8 = vsyncpa [#allocation3], 0  ;;  %s910_s0 = inlined_call_operand.hbm [shape: f32[2,64,256], index: 0, kind: input, shape index: {}]   ;;  %s911_s1 = inlined_call_operand.vmem [shape: f32[64,4], index: 1, kind: input, shape index: {}]   ;;  %s912_s2 = inlined_call_operand.vmem [shape: f32[4,64], index: 2, kind: input, shape index: {}]   ;;  %s913_s3 = inlined_call_operand.hbm [shape: f32[2,1,64], index: 3, kind: output, shape index: {}]  }
   0x1   :  { %10 = vsyncpa [#allocation3 + $0x1], 0 }
   0x2   :  { %11 = vsyncpa [#allocation4], 0 }
   0x3   :  { %13 = vsyncpa [#allocation4 + $0x1], 0  ;;  %s721_s12 = smov 0   ;;  %s723_s13 = smov 0  }
   0x4   :  { %s725_s14 = smov 0   ;;  %s727_s15 = smov 0  }
   0x5 LB: > { %s742_s16 = sadd.s32 4294967295, %s697_s15   ;;  %s531_s17 = sadd.s32 4294967294, %s697_s15   ;;  %s697_s15 = sphi %s727_s15, %s923_s15   ;;  %s693_s14 = sphi %s725_s14, %s922_s14   ;;  %s689_s13 = sphi %s723_s13, %s921_s13   ;;  %s685_s12 = sphi %s721_s12, %s920_s12  }
   0x6   : > { %s746_s18 = sadd.s32 1, %s697_s15   ;;  %s26_s19 = sadd.s32 1, %s693_s14 }
   0x7   : > { %s23_s20 = ssub.s32 %s697_s15, %s746_s18  ;;  %p33_p0 = scmp.ne.s32.totalorder %s693_s14, %s689_s13 }
   0x8   : > { %p24_p1 = scmp.eq.s32.totalorder %s23_s20, 0  ;;  %p34_p2 = scmp.eq.s32.totalorder %s697_s15, 0 }
   0x9   : > { %p39_p3 = scmp.ne.s32.totalorder %s689_s13, %s685_s12  ;;  %p40_p4 = scmp.eq.s32.totalorder %s742_s16, 0 }
   0xa   : > { %s758_s21 = scalar_select %p24_p1, %s693_s14, %s26_s19  }
   0xb   : > { %p760_p5 = por %p34_p2, %p33_p0  ;;  %p764_p6 = por %p40_p4, %p39_p3 }
   0xc   : > { %p105_p7 = scmp.eq.s32.totalorder %s742_s16, 1  ;;  %p111_p8 = scmp.eq.s32.totalorder %s531_s17, 1 }
   0xd   : > { %p561_p10 = scmp.lt.s32.totalorder %s697_s15, 2  ;;  %s137_s26 = sand.u32 1, %s693_s14  }
   0xe   : > { %p771_p11 = por %p105_p7, %p33_p0  ;;  %p775_p12 = por %p111_p8, %p39_p3 }
   0xf   : > { %s548_s27 = sshll.u32 %s697_s15, 7  ;;  %s534_s28 = sshll.u32 %s137_s26, 7 }
  0x10   : > { %s146_s4 = scalar_lea.hbm %s910_s0, %s548_s27  ;;  %s141_s6 = scalar_lea.vmem [#allocation2], %s534_s28 }
  0x11   : > { %s147_s5 = sshll.u32 %s146_s4, 4  ;;  %s149_s7 = sshll.u32 %s141_s6, 4  ;;  %s148_s5 = int_to_ptr.hbm [resolvable:$true] %s147_s5  ;;  %s150_s7 = int_to_ptr.vmem [resolvable:$true] %s149_s7 }
  0x12   : > { %p786_p13 = pnand %p561_p10, %p760_p5  ;;  %p537_p0 = scmp.ge.s32.totalorder %s697_s15, 1 }
  0x13   : > { %p157_p1 = scmp.lt.s32.totalorder %s697_s15, 3  ;;  %s138_s9 = scalar_lea.sflag [#allocation3], %s137_s26 }
  0x14   : > { %s601_s10 = sshra.s32 %s148_s5, 4  ;;  %p605_p3 = pneg %p786_p13  ;;  %s602_s10 = int_to_ptr.hbm [resolvable:$true] %s601_s10 }
  0x15   : > { %s603_s11 = scalar_lea.hbm %s602_s10, 128  ;;  %s608_s20 = scalar_lea.hbm %s910_s0, 256 }
  0x16   : > { %p604_p2 = scmp.ne.s32.totalorder %s602_s10, %s603_s11  ;;  %p609_p5 = scmp.lt.s32.totalorder %s602_s10, %s910_s0 }
  0x17   : > { %p610_p8 = scmp.lt.s32.totalorder %s608_s20, %s603_s11 }
  0x18   : > { %p606_p4 = pnand %p605_p3, %p604_p2 }
  0x19   : > { %p611_p10 = por %p610_p8, %p609_p5 }
  0x1a   : > { %p607_p7 = pneg %p606_p4 }
  0x1c   : > { %p612_p9 = pnand %p611_p10, %p607_p7 }
  0x1e   : > { %615 = shalt.err (!%p612_p9)
}
  0x1f   : > { %s699_s26 = smov 256   ;;  %s700_s28 = smov 16  }
  0x20   : > { %556 = dma.hbm_to_vmem [thread:$0]  (!%p786_p13), %s148_s5, 2048, %s150_s7, %s138_s9, %s699_s26, %s699_s26, %s700_s28  }
  0x21   : > { %p158_p2 = pnand %p537_p0, %p157_p1 }
  0x22   : > { %s807_s29 = sand.u32 (!%p158_p2), 1, %s689_s13  }
  0x23   : > { %161 = sbr.rel (%p158_p2) target bundleno = 497 (0x1f1), region = 32  ;;  %s538_s30 = sshll.u32 (!%p158_p2), %s807_s29, 7 }
  0x24   : > { %s164_s4 = scalar_lea.sflag (!%p158_p2), [#allocation3], %s807_s29  ;;  %s811_s6 = scalar_lea.vmem (!%p158_p2), [#allocation2], %s538_s30 }
  0x28   : > { %676 = dma.done.wait (%p764_p6), %s164_s4, 2048  }
  0x29   : > { %678 = vsyncadd (%p764_p6), %s164_s4, 4294965248  ;;  %v194_v0 = vld [vmem:[%s811_s6 + $0x20] sm:$0xff]  ;;  %v195_v1 = vld [vmem:[%s811_s6 + $0x28] sm:$0xff]  ;;  %v279_v46 = vlaneseq  ;;  %vm284_vm0 = vcmask 130112   ;;  %vm288_vm1 = vcmask 195712   ;;  %vm292_vm2 = vcmask 261312   ;;  %s461_s8 = scalar_lea.hbm %s913_s3, %s742_s16 }
  0x2a   : > { %v190_v2 = vld [vmem:[%s811_s6] sm:$0xff]  ;;  %v212_v3 = vadd.f32 %v195_v1, %v194_v0  ;;  %v191_v4 = vld [vmem:[%s811_s6 + $0x8] sm:$0xff]  ;;  %v196_v7 = vld [vmem:[%s811_s6 + $0x30] sm:$0xff]  ;;  %v244_v18 = vmax.f32 %v194_v0, %v195_v1  ;;  %vm296_vm3 = vcmask 326912   ;;  %vm300_vm4 = vcmask 392512   ;;  %s189_s9 = scalar_lea.vmem [#allocation5], %s807_s29 }
  0x2b   : > { %v238_v5 = vmax.f32 %v190_v2, %v191_v4  ;;  %v206_v6 = vadd.f32 %v191_v4, %v190_v2  ;;  %v197_v8 = vld [vmem:[%s811_s6 + $0x38] sm:$0xff]  ;;  %v192_v9 = vld [vmem:[%s811_s6 + $0x10] sm:$0xff]  ;;  %v198_v14 = vld [vmem:[%s811_s6 + $0x40] sm:$0xff]  ;;  %v280_v50 = vand.u32 127, %v279_v46  ;;  %vm304_vm5 = vcmask 458112   ;;  %s463_s10 = sshll.u32 %s189_s9, 4  ;;  %s464_s10 = int_to_ptr.vmem [resolvable:$true] %s463_s10 }
  0x2c   : > { %213 = vadd.xlane.f32.xlu1 %v212_v3  ;;  %v193_v10 = vld [vmem:[%s811_s6 + $0x18] sm:$0xff]  ;;  %v215_v11 = vadd.f32 %v197_v8, %v196_v7  ;;  %v199_v15 = vld [vmem:[%s811_s6 + $0x48] sm:$0xff]  ;;  %v200_v16 = vld [vmem:[%s811_s6 + $0x50] sm:$0xff]  ;;  %v247_v24 = vmax.f32 %v196_v7, %v197_v8  ;;  %vm308_vm6 = vcmask 523712   ;;  %vm310_vm7 = vcmask 523264   ;;  %s465_s11 = sshll.u32 %s461_s8, 4  ;;  %s466_s11 = int_to_ptr.hbm [resolvable:$true] %s465_s11 }
  0x2d   : > { %239 = vmax.xlane.f32.xlu2 %v238_v5  ;;  %207 = vadd.xlane.f32.xlu0 %v206_v6  ;;  %v241_v12 = vmax.f32 %v192_v9, %v193_v10  ;;  %v209_v13 = vadd.f32 %v193_v10, %v192_v9  ;;  %v201_v17 = vld [vmem:[%s811_s6 + $0x58] sm:$0xff]  ;;  %v218_v19 = vadd.f32 %v199_v15, %v198_v14  ;;  %v202_v21 = vld [vmem:[%s811_s6 + $0x60] sm:$0xff]  ;;  %v203_v22 = vld [vmem:[%s811_s6 + $0x68] sm:$0xff]  ;;  %v282_v53 = vadd.s32 4294967288, %v280_v50  ;;  %s453_s16 = scalar_lea.sflag [#allocation4], %s807_s29  ;;  %s645_s17 = sshra.s32 %s466_s11, 4  ;;  %s646_s17 = int_to_ptr.hbm [resolvable:$true] %s645_s17 }
  0x2e   : > { %v221_v20 = vadd.f32 %v201_v17, %v200_v16  ;;  %v224_v23 = vadd.f32 %v203_v22, %v202_v21  ;;  %v250_v25 = vmax.f32 %v198_v14, %v199_v15  ;;  %v204_v26 = vld [vmem:[%s811_s6 + $0x70] sm:$0xff]  ;;  %v205_v27 = vld [vmem:[%s811_s6 + $0x78] sm:$0xff]  ;;  %v253_v28 = vmax.f32 %v200_v16, %v201_v17  ;;  %v267_v34 = vld [vmem:[%s911_s1 + $0x28] sm:$0xff]  ;;  %s647_s19 = scalar_lea.hbm %s646_s17, 1  ;;  %s651_s27 = scalar_lea.hbm %s913_s3, 2 }
  0x2f   : > { %v227_v29 = vadd.f32 %v205_v27, %v204_v26  ;;  %v256_v30 = vmax.f32 %v202_v21, %v203_v22  ;;  %v259_v31 = vmax.f32 %v204_v26, %v205_v27  ;;  %v269_v32 = vld [vmem:[%s911_s1 + $0x38] sm:$0xff]  ;;  %v268_v33 = vld [vmem:[%s911_s1 + $0x30] sm:$0xff]  ;;  %v266_v35 = vld [vmem:[%s911_s1 + $0x20] sm:$0xff]  ;;  %v286_v55 = vadd.s32 4294967280, %v280_v50  ;;  %p648_p6 = scmp.ne.s32.totalorder %s646_s17, %s647_s19  ;;  %p652_p0 = scmp.lt.s32.totalorder %s646_s17, %s913_s3 }
  0x30   : > { %321 = vmatpush.msra.mxu0 %v269_v32  ;;  %367 = vmatpush.msra.mxu1 %v269_v32  ;;  %v265_v36 = vld [vmem:[%s911_s1 + $0x18] sm:$0xff]  ;;  %v264_v40 = vld [vmem:[%s911_s1 + $0x10] sm:$0xff]  ;;  %v263_v41 = vld [vmem:[%s911_s1 + $0x8] sm:$0xff]  ;;  %v290_v58 = vadd.s32 4294967272, %v280_v50  ;;  %v294_v61 = vadd.s32 4294967264, %v280_v50  ;;  %v298_v4 = vadd.s32 4294967256, %v280_v50  ;;  %p653_p1 = scmp.lt.s32.totalorder %s651_s27, %s647_s19 }
  0x31   : > { %v262_v42 = vld [vmem:[%s911_s1] sm:$0xff]  ;;  %v302_v8 = vadd.s32 4294967248, %v280_v50  ;;  %v306_v16 = vadd.s32 4294967240, %v280_v50  ;;  %vm384_vm8 = vcmask 1043456   ;;  %vm380_vm9 = vcmask 31744   ;;  %p649_p9 = pnand %p648_p6, %p771_p11 }
  0x32   : > { %322 = vmatpush.msra.mxu0 %v268_v33  ;;  %368 = vmatpush.msra.mxu1 %v268_v33  ;;  %vm450_vm13 = vcmask 516096   ;;  %p654_p3 = por %p653_p1, %p652_p0 }
  0x33   : > { %p650_p13 = pneg %p649_p9 }
  0x34   : > { %216 = vadd.xlane.f32.xlu1 %v215_v11  ;;  %323 = vmatpush.msra.mxu0 %v267_v34 }
  0x35   : > { %242 = vmax.xlane.f32.xlu2 %v241_v12  ;;  %210 = vadd.xlane.f32.xlu0 %v209_v13  ;;  %p655_p4 = pnand %p654_p3, %p650_p13 }
  0x36   : > { %369 = vmatpush.msra.mxu1 %v267_v34  ;;  %324 = vmatpush.msra.mxu0 %v266_v35 }
  0x38   : > { %370 = vmatpush.msra.mxu1 %v266_v35  ;;  %325 = vmatpush.msra.mxu0 %v265_v36 }
  0x3a   : > { %371 = vmatpush.msra.mxu1 %v265_v36  ;;  %326 = vmatpush.msra.mxu0 %v264_v40 }
  0x3c   : > { %245 = vmax.xlane.f32.xlu1 %v244_v18  ;;  %372 = vmatpush.msra.mxu1 %v264_v40 }
  0x3d   : > { %219 = vadd.xlane.f32.xlu0 %v218_v19  ;;  %222 = vadd.xlane.f32.xlu2 %v221_v20 }
  0x3e   : > { %327 = vmatpush.msra.mxu0 %v263_v41  ;;  %373 = vmatpush.msra.mxu1 %v263_v41 }
  0x40   : > { %328 = vmatpush.msra.mxu0 %v262_v42  ;;  %374 = vmatpush.msra.mxu1 %v262_v42 }
  0x44   : > { %225 = vadd.xlane.f32.xlu1 %v224_v23 }
  0x45   : > { %248 = vmax.xlane.f32.xlu0 %v247_v24  ;;  %251 = vmax.xlane.f32.xlu2 %v250_v25 }
  0x4c   : > { %254 = vmax.xlane.f32.xlu1 %v253_v28 }
  0x4d   : > { %228 = vadd.xlane.f32.xlu0 %v227_v29  ;;  %257 = vmax.xlane.f32.xlu2 %v256_v30 }
  0x55   : > { %260 = vmax.xlane.f32.xlu0 %v259_v31 }
  0x9f   : > { %v214_v37 = vpop.xlane.xlu1 %213 }
  0xa0   : > { %v240_v38 = vpop.xlane.xlu2 %239  ;;  %v208_v39 = vpop.xlane.xlu0 %207  ;;  %v232_v56 = vmul.f32 0.00390625, %v214_v37 }
  0xa1   : > { %v230_v52 = vmul.f32 0.00390625, %v208_v39  ;;  %v342_v10 = vperm.slane %v240_v38, %v280_v50  ;;  %v270_v39 = vld [vmem:[%s912_s2] sm:$0xf] }
  0xa2   : > { %v287_v2 = vperm.slane %v232_v56, %v286_v55  ;;  %543 = vmatpush.msk.msra.mxu3 %vm384_vm8, %v270_v39  ;;  %541 = vmatpush.msk.msra.mxu2 %vm384_vm8, %v270_v39 }
  0xa3   : > { %v281_v57 = vperm.slane %v230_v52, %v280_v50 }
  0xa7   : > { %v217_v43 = vpop.xlane.xlu1 %216 }
  0xa8   : > { %v243_v44 = vpop.xlane.xlu2 %242  ;;  %v211_v45 = vpop.xlane.xlu0 %210  ;;  %v233_v59 = vmul.f32 0.00390625, %v217_v43 }
  0xa9   : > { %v231_v51 = vmul.f32 0.00390625, %v211_v45  ;;  %v343_v11 = vperm.slane %v243_v44, %v282_v53 }
  0xaa   : > { %v291_v3 = vperm.slane %v233_v59, %v290_v58 }
  0xab   : > { %v283_v54 = vperm.slane %v231_v51, %v282_v53  ;;  %v344_v21 = vsel %vm284_vm0, %v343_v11, %v342_v10 }
  0xad   : > { %v285_v0 = vsel %vm284_vm0, %v283_v54, %v281_v57 }
  0xae   : > { %v289_v6 = vsel %vm288_vm1, %v287_v2, %v285_v0 }
  0xaf   : > { %v246_v47 = vpop.xlane.xlu1 %245  ;;  %v293_v13 = vsel %vm292_vm2, %v291_v3, %v289_v6 }
  0xb0   : > { %v220_v48 = vpop.xlane.xlu0 %219  ;;  %v223_v49 = vpop.xlane.xlu2 %222  ;;  %v345_v12 = vperm.slane %v246_v47, %v286_v55 }
  0xb1   : > { %v234_v62 = vmul.f32 0.00390625, %v220_v48  ;;  %v235_v5 = vmul.f32 0.00390625, %v223_v49 }
  0xb2   : > { %v346_v23 = vsel %vm288_vm1, %v345_v12, %v344_v21 }
  0xb3   : > { %v295_v7 = vperm.slane %v234_v62, %v294_v61  ;;  %v299_v14 = vperm.slane %v235_v5, %v298_v4 }
  0xb5   : > { %v297_v17 = vsel %vm296_vm3, %v295_v7, %v293_v13 }
  0xb6   : > { %v301_v29 = vsel %vm300_vm4, %v299_v14, %v297_v17 }
  0xb7   : > { %v226_v60 = vpop.xlane.xlu1 %225 }
  0xb8   : > { %v249_v63 = vpop.xlane.xlu0 %248  ;;  %v252_v1 = vpop.xlane.xlu2 %251  ;;  %v236_v9 = vmul.f32 0.00390625, %v226_v60 }
  0xb9   : > { %v347_v15 = vperm.slane %v249_v63, %v290_v58  ;;  %v349_v24 = vperm.slane %v252_v1, %v294_v61 }
  0xba   : > { %v303_v18 = vperm.slane %v236_v9, %v302_v8 }
  0xbb   : > { %v348_v25 = vsel %vm292_vm2, %v347_v15, %v346_v23 }
  0xbc   : > { %v305_v30 = vsel %vm304_vm5, %v303_v18, %v301_v29  ;;  %v350_v32 = vsel %vm296_vm3, %v349_v24, %v348_v25 }
  0xbf   : > { %v255_v19 = vpop.xlane.xlu1 %254 }
  0xc0   : > { %v229_v20 = vpop.xlane.xlu0 %228  ;;  %v351_v26 = vperm.slane %v255_v19, %v298_v4  ;;  %v258_v28 = vpop.xlane.xlu2 %257 }
  0xc1   : > { %v237_v22 = vmul.f32 0.00390625, %v229_v20  ;;  %v353_v33 = vperm.slane %v258_v28, %v302_v8 }
  0xc2   : > { %v352_v34 = vsel %vm300_vm4, %v351_v26, %v350_v32 }
  0xc3   : > { %v307_v27 = vperm.slane %v237_v22, %v306_v16  ;;  %v354_v37 = vsel %vm304_vm5, %v353_v33, %v352_v34 }
  0xc5   : > { %v309_v31 = vsel %vm308_vm6, %v307_v27, %v305_v30 }
  0xc6   : > { %539 = vmatmul.msk.f32.vlgmr.msra.gmra.mxu0 %vm310_vm7, %v309_v31 }
  0xc8   : > { %v261_v35 = vpop.xlane.xlu0 %260 }
  0xc9   : > { %v355_v36 = vperm.slane %v261_v35, %v306_v16 }
  0xcb   : > { %v356_v38 = vsel %vm308_vm6, %v355_v36, %v354_v37 }
  0xcc   : > { %540 = vmatmul.msk.f32.vlgmr.msra.gmra.mxu1 %vm310_vm7, %v356_v38 }
 0x143   : > { %v330_v40 = vpop.f32.mrf.mxu0 }
 0x144   : > { %v333_v41 = vmax.f32 %v330_v40, 0.0 }
 0x146   : > { %544 = vmatmul.msk.f32.vlgmr.msra.gmra.mxu3 %vm380_vm9, %v333_v41 }
 0x149   : > { %v376_v42 = vpop.f32.mrf.mxu1 }
 0x14a   : > { %v379_v43 = vmax.f32 %v376_v42, 0.0 }
 0x14c   : > { %542 = vmatmul.msk.f32.vlgmr.msra.gmra.mxu2 %vm380_vm9, %v379_v43 }
 0x1c9   : > { %v428_v44 = vpop.f32.mrf.mxu3 }
 0x1cf   : > { %v405_v45 = vpop.f32.mrf.mxu2 }
 0x1d0   : > { %v429_v46 = vadd.f32 %v428_v44, %v405_v45 }
 0x1d2   : > { %v545_v47 = vmul.f32 -1.442695, %v429_v46 }
 0x1d4   : > { %597 = vpow2.f32 %v545_v47 }
 0x1da   : > { %v598_v48 = vpop.eup %597 }
 0x1db   : > { %v434_v49 = vadd.f32 1.0, %v598_v48 }
 0x1dd   : > { %599 = vrcp.f32 %v434_v49  ;;  %v446_v53 = vand.u32 2147483648, %v434_v49  ;;  %v444_v55 = vand.u32 2147483647, %v434_v49  ;;  %vm440_vm11 = vweird.f32 %v434_v49 }
 0x1df   : > { %v447_v57 = vor.u32 1.1754944e-38, %v446_v53  ;;  %vm445_vm14 = vcmp.eq.f32.partialorder %v444_v55, 8.507059e+37 }
 0x1e3   : > { %v600_v50 = vpop.eup %599 }
 0x1e4   : > { %v436_v51 = vmul.f32 %v600_v50, %v434_v49  ;;  %vm441_vm10 = vweird.f32 %v600_v50 }
 0x1e5   : > { %vm442_vm12 = vmor %vm440_vm11, %vm441_vm10 }
 0x1e6   : > { %v437_v52 = vsub.f32 1.0, %v436_v51 }
 0x1e8   : > { %v438_v54 = vmul.f32 %v600_v50, %v437_v52 }
 0x1ea   : > { %v439_v56 = vadd.f32 %v600_v50, %v438_v54 }
 0x1ec   : > { %v443_v58 = vsel %vm442_vm12, %v600_v50, %v439_v56 }
 0x1ed   : > { %v448_v59 = vsel %vm445_vm14, %v447_v57, %v443_v58 }
 0x1ee   : > { %451 = vst.msk [vmem:[%s189_s9] sm:$0x1] %vm450_vm13, %v448_v59 }
 0x1ef   : > { %658 = shalt.err (!%p655_p4)
}
 0x1f0   : > { %551 = dma.vmem_to_hbm [thread:$0]  (%p771_p11), %s464_s10, 16, %s466_s11, %s453_s16  }
 0x1f1 PF: > { %s477_s29 = sand.u32 1, %s685_s12   ;;  %p919_p7 = scmp.ge.s32.totalorder %s697_s15, 2 }
 0x1f2   : > { %s478_s30 = scalar_lea.sflag [#allocation4], %s477_s29 }
 0x1f3   : > { %p558_p5 = pnand %p919_p7, %p775_p12 }
 0x1f5   : > { %p559_p8 = pneg %p558_p5 }
 0x1f7   : > { %680 = dma.done.wait (%p559_p8), %s478_s30, 16  }
 0x1f8   : > { %682 = vsyncadd (%p559_p8), %s478_s30, 4294967280  ;;  %p16_p10 = scmp.ge.s32.totalorder %s746_s18, 4   ;;  %s920_s12 = smov %s689_s13 }
 0x1f9   : > { %s921_s13 = smov %s693_s14  ;;  %s922_s14 = smov %s758_s21 }
 0x1fa   : > { %s923_s15 = smov %s746_s18  ;;  %18 = sbr.rel (!%p16_p10) target bundleno = 5 (0x5), region = 77 }
 0x1ff   :  { %483 = vsyncpa [#allocation3], 1 }
 0x200   :  { %485 = vsyncpa [#allocation3 + $0x1], 1 }
 0x201   :  { %486 = vsyncpa [#allocation4], 1 }
 0x202   :  { %488 = vsyncpa [#allocation4 + $0x1], 1 }

</bundles_post_ra>
